<compile_context>
chip_gen: v5e
topology: v5e:2x2
jax: 0.10.0
libtpu: 0.0.40
codegen_flags: <defaults>
</compile_context>

<pallas_src>
import functools

import jax
import jax.numpy as jnp
from jax.experimental import pallas as pl
from jax.experimental.pallas import tpu as pltpu


def _round_up(n, m):
    return ((n + m - 1) // m) * m


def ddfilter_kernel(x_ref, w_red_ref, w_dc_ref, b_ref, out_ref):
    # x_ref:     [TB, D]  batch tile (ragged last tile handled by Pallas masking)
    # w_red_ref: [D,  H]  W_reduce^T, VMEM-resident across grid steps
    # w_dc_ref:  [H,  C]  fused W_dd^T @ W_cls^T, VMEM-resident
    # b_ref:     [1,  C]  classifier bias
    # out_ref:   [TB, C]  true-width (narrow) output
    g1 = jnp.dot(x_ref[...], w_red_ref[...],
                 preferred_element_type=jnp.float32)            # [TB, H]
    g1_sq = g1 * g1                                             # square nonlinearity
    out = jnp.dot(g1_sq, w_dc_ref[...],
                  preferred_element_type=jnp.float32)           # [TB, C]
    out_ref[...] = (out + b_ref[...]).astype(out_ref.dtype)


def prepare_params(w_reduce, w_dd, w_cls, b_cls):
    """One-time parameter prep: transpose the reduce weight, fuse dd+classifier."""
    w_red_t = jnp.transpose(w_reduce)                   # [D, H]
    w_dc = jnp.transpose(w_dd) @ jnp.transpose(w_cls)   # [H, C]
    b2 = jnp.reshape(b_cls, (1, -1))                    # [1, C]
    return w_red_t, w_dc, b2


def _batch_tile(batch, block_b, dtype):
    # Sublane granularity for the block's second-to-last dim (bf16 packs 16).
    sub = 16 if dtype == jnp.bfloat16 else 8
    # Keep >= 2 grid steps whenever B allows (v7x dual-TC sharding) while
    # capping at block_b so each step's DMA amortizes the per-step overhead.
    tb = min(block_b, _round_up(max(pl.cdiv(batch, 2), 1), sub))
    return max(tb, sub)


@functools.partial(jax.jit, static_argnames=("block_b",))
def ddfilter_forward(x, w_red_t, w_dc, b2, *, block_b=4096):
    """x: [B, D]; remaining args come from prepare_params(). Returns [B, C]."""
    B, D = x.shape
    H = w_red_t.shape[1]
    C = w_dc.shape[1]

    tb = _batch_tile(B, block_b, x.dtype)
    grid = (pl.cdiv(B, tb),)   # ragged last block allowed: op is row-wise

    return pl.pallas_call(
        ddfilter_kernel,
        out_shape=jax.ShapeDtypeStruct((B, C), x.dtype),
        grid_spec=pltpu.PrefetchScalarGridSpec(
            num_scalar_prefetch=0,
            grid=grid,
            in_specs=[
                pl.BlockSpec((tb, D), lambda i: (i, 0)),   # x batch tile (pipelined)
                pl.BlockSpec((D, H), lambda i: (0, 0)),    # resident reduce weight
                pl.BlockSpec((H, C), lambda i: (0, 0)),    # resident fused weight
                pl.BlockSpec((1, C), lambda i: (0, 0)),    # resident bias
            ],
            out_specs=pl.BlockSpec((tb, C), lambda i: (i, 0)),
        ),
        compiler_params=pltpu.CompilerParams(
            dimension_semantics=("parallel",),   # batch shards across v7x's 2 TCs
        ),
    )(x, w_red_t, w_dc, b2)


def ddfilter_reference(x, w_reduce, w_dd, w_cls, b_cls):
    g1 = x @ w_reduce.T
    g1_sq = g1 * g1
    g2 = g1_sq @ w_dd.T
    return g2 @ w_cls.T + b_cls


if __name__ == "__main__":
    input_dim, hidden_dim, num_classes = 128, 16, 2

    key = jax.random.PRNGKey(0)
    kx, kr, kd, kc, kb = jax.random.split(key, 5)

    # nn.Linear-style uniform parameter init.
    lim_r = 1.0 / (input_dim ** 0.5)
    lim_h = 1.0 / (hidden_dim ** 0.5)
    w_reduce = jax.random.uniform(kr, (hidden_dim, input_dim),
                                  minval=-lim_r, maxval=lim_r, dtype=jnp.float32)
    w_dd = jax.random.uniform(kd, (hidden_dim, hidden_dim),
                              minval=-lim_h, maxval=lim_h, dtype=jnp.float32)
    w_cls = jax.random.uniform(kc, (num_classes, hidden_dim),
                               minval=-lim_h, maxval=lim_h, dtype=jnp.float32)
    b_cls = jax.random.uniform(kb, (num_classes,),
                               minval=-lim_h, maxval=lim_h, dtype=jnp.float32)

    # One-time parameter prep (transpose + fuse) outside the per-call path.
    w_red_t, w_dc, b2 = prepare_params(w_reduce, w_dd, w_cls, b_cls)

    # batch=8 exercises the exact-tile path; batch=20 exercises a 2-step grid
    # with a ragged last block (masked writeback path).
    for batch in (8, 20):
        x = jax.random.normal(jax.random.fold_in(kx, batch),
                              (batch, input_dim), dtype=jnp.float32)
        out = jax.block_until_ready(ddfilter_forward(x, w_red_t, w_dc, b2))
        ref = ddfilter_reference(x, w_reduce, w_dd, w_cls, b_cls)
        assert out.shape == (batch, num_classes)
        assert jnp.allclose(out, ref, atol=1e-4, rtol=1e-4), \
            f"mismatch vs reference (batch={batch})"

    print("KERNEL_OK")
</pallas_src>

<mosaic_0001>
module attributes {stable_mosaic.version = 11 : i64} {
  func.func @ddfilter_kernel(%arg0: i32, %arg1: memref<8x128xf32, #tpu.memory_space<vmem>>, %arg2: memref<128x16xf32, #tpu.memory_space<vmem>>, %arg3: memref<16x2xf32, #tpu.memory_space<vmem>>, %arg4: memref<1x2xf32, #tpu.memory_space<vmem>>, %arg5: memref<8x2xf32, #tpu.memory_space<vmem>>) attributes {dimension_semantics = [#tpu.dimension_semantics<parallel>], iteration_bounds = array<i64: 1>, scalar_prefetch = 0 : i64, scratch_operands = 0 : i64, tpu.core_type = #tpu.core_type<tc>, window_params = [{transform_indices = @transform_0, window_bounds = array<i64: 8, 128>}, {pipeline_mode = #tpu.pipeline_mode<synchronous>, transform_indices = @transform_1, window_bounds = array<i64: 128, 16>}, {pipeline_mode = #tpu.pipeline_mode<synchronous>, transform_indices = @transform_2, window_bounds = array<i64: 16, 2>}, {pipeline_mode = #tpu.pipeline_mode<synchronous>, transform_indices = @transform_3, window_bounds = array<i64: 1, 2>}, {transform_indices = @transform_4, window_bounds = array<i64: 8, 2>}]} {
    %c0 = arith.constant 0 : index
    %c0_0 = arith.constant 0 : index
    %0 = vector.load %arg1[%c0, %c0_0] : memref<8x128xf32, #tpu.memory_space<vmem>>, vector<8x128xf32>
    %c0_1 = arith.constant 0 : index
    %c0_2 = arith.constant 0 : index
    %1 = vector.load %arg2[%c0_1, %c0_2] : memref<128x16xf32, #tpu.memory_space<vmem>>, vector<128x16xf32>
    %cst = arith.constant dense<0.000000e+00> : vector<8x16xf32>
    %2 = tpu.matmul %0, %1, %cst {dimension_numbers = #tpu.dot_dimension_numbers<[1], [0], [0], [1], [0, 0, 1, 1], [], []>} : vector<8x128xf32>, vector<128x16xf32>, vector<8x16xf32> -> vector<8x16xf32>
    %3 = arith.mulf %2, %2 : vector<8x16xf32>
    %c0_3 = arith.constant 0 : index
    %c0_4 = arith.constant 0 : index
    %4 = vector.load %arg3[%c0_3, %c0_4] : memref<16x2xf32, #tpu.memory_space<vmem>>, vector<16x2xf32>
    %cst_5 = arith.constant dense<0.000000e+00> : vector<8x2xf32>
    %5 = tpu.matmul %3, %4, %cst_5 {dimension_numbers = #tpu.dot_dimension_numbers<[1], [0], [0], [1], [0, 0, 1, 1], [], []>} : vector<8x16xf32>, vector<16x2xf32>, vector<8x2xf32> -> vector<8x2xf32>
    %c0_6 = arith.constant 0 : index
    %c0_7 = arith.constant 0 : index
    %6 = vector.load %arg4[%c0_6, %c0_7] : memref<1x2xf32, #tpu.memory_space<vmem>>, vector<1x2xf32>
    %7 = vector.broadcast %6 : vector<1x2xf32> to vector<8x2xf32>
    %8 = arith.addf %5, %7 : vector<8x2xf32>
    %c0_8 = arith.constant 0 : index
    %c0_9 = arith.constant 0 : index
    %9 = vector.load %arg5[%c0_8, %c0_9] : memref<8x2xf32, #tpu.memory_space<vmem>>, vector<8x2xf32>
    tpu.vector_store %arg5[%c0_8, %c0_9], %8 {strides = array<i32>} : memref<8x2xf32, #tpu.memory_space<vmem>>, vector<8x2xf32>,
    return
  }
  func.func @transform_0(%arg0: i32) -> (i32, i32) {
    %c0_i32 = arith.constant 0 : i32
    %c0_i32_0 = arith.constant 0 : i32
    return %arg0, %c0_i32 : i32, i32
  }
  func.func @transform_1(%arg0: i32) -> (i32, i32) {
    %c0_i32 = arith.constant 0 : i32
    %c0_i32_0 = arith.constant 0 : i32
    %c0_i32_1 = arith.constant 0 : i32
    return %c0_i32, %c0_i32_0 : i32, i32
  }
  func.func @transform_2(%arg0: i32) -> (i32, i32) {
    %c0_i32 = arith.constant 0 : i32
    %c0_i32_0 = arith.constant 0 : i32
    %c0_i32_1 = arith.constant 0 : i32
    return %c0_i32, %c0_i32_0 : i32, i32
  }
  func.func @transform_3(%arg0: i32) -> (i32, i32) {
    %c0_i32 = arith.constant 0 : i32
    %c0_i32_0 = arith.constant 0 : i32
    %c0_i32_1 = arith.constant 0 : i32
    return %c0_i32, %c0_i32_0 : i32, i32
  }
  func.func @transform_4(%arg0: i32) -> (i32, i32) {
    %c0_i32 = arith.constant 0 : i32
    %c0_i32_0 = arith.constant 0 : i32
    return %arg0, %c0_i32 : i32, i32
  }
}

</mosaic_0001>

<bundles_post_ra>
// kernel: ddfilter_forward.1
= control target key start
LH: loop header
LB: loop body
LE: loop exit
PB: predicated region body
PF: predicated region fallthrough
CT: control target
= control target key end

     0   :  { %vm61_vm0 = vcmask 130048   ;;  %vm85_vm1 = vcmask 15360   ;;  %s181_s1 = inlined_call_operand.vmem [shape: f32[128,16], index: 1, kind: input, shape index: {}]   ;;  %s182_s0 = inlined_call_operand.vmem [shape: f32[8,128], index: 0, kind: input, shape index: {}]   ;;  %s183_s3 = inlined_call_operand.vmem [shape: f32[1,2], index: 3, kind: input, shape index: {}]   ;;  %s184_s2 = inlined_call_operand.vmem [shape: f32[16,2], index: 2, kind: input, shape index: {}]   ;;  %s185_s4 = inlined_call_operand.vmem [shape: f32[8,2], index: 4, kind: output, shape index: {}]  }
   0x1   :  { %v33_v0 = vld [vmem:[%s181_s1 + $0x78] sm:$0xff]  ;;  %v32_v1 = vld [vmem:[%s181_s1 + $0x70] sm:$0xff]  ;;  %v31_v2 = vld [vmem:[%s181_s1 + $0x68] sm:$0xff] }
   0x2   :  { %34 = vmatpush.msra.mxu0 %v33_v0  ;;  %v30_v3 = vld [vmem:[%s181_s1 + $0x60] sm:$0xff]  ;;  %v29_v4 = vld [vmem:[%s181_s1 + $0x58] sm:$0xff]  ;;  %v28_v5 = vld [vmem:[%s181_s1 + $0x50] sm:$0xff] }
   0x3   :  { %v27_v6 = vld [vmem:[%s181_s1 + $0x48] sm:$0xff]  ;;  %v26_v7 = vld [vmem:[%s181_s1 + $0x40] sm:$0xff]  ;;  %v25_v8 = vld [vmem:[%s181_s1 + $0x38] sm:$0xff] }
   0x4   :  { %35 = vmatpush.msra.mxu0 %v32_v1  ;;  %v24_v9 = vld [vmem:[%s181_s1 + $0x30] sm:$0xff]  ;;  %v23_v10 = vld [vmem:[%s181_s1 + $0x28] sm:$0xff]  ;;  %v22_v11 = vld [vmem:[%s181_s1 + $0x20] sm:$0xff] }
   0x5   :  { %v21_v12 = vld [vmem:[%s181_s1 + $0x18] sm:$0xff]  ;;  %v20_v13 = vld [vmem:[%s181_s1 + $0x10] sm:$0xff]  ;;  %v19_v14 = vld [vmem:[%s181_s1 + $0x8] sm:$0xff] }
   0x6   :  { %36 = vmatpush.msra.mxu0 %v31_v2  ;;  %v18_v15 = vld [vmem:[%s181_s1] sm:$0xff]  ;;  %v56_v17 = vld [vmem:[%s184_s2 + $0x8] sm:$0xff] }
   0x7   :  { %v17_v16 = vld [vmem:[%s182_s0] sm:$0xff]  ;;  %79 = vmatpush.msra.mxu1 %v56_v17 }
   0x8   :  { %37 = vmatpush.msra.mxu0 %v30_v3  ;;  %v55_v18 = vld [vmem:[%s184_s2] sm:$0xff] }
   0x9   :  { %80 = vmatpush.msra.mxu1 %v55_v18  ;;  %v92_v21 = vld [vmem:[%s183_s3] ss:$0 sm:$0xff] }
   0xa   :  { %38 = vmatpush.msra.mxu0 %v29_v4 }
   0xc   :  { %39 = vmatpush.msra.mxu0 %v28_v5 }
   0xe   :  { %40 = vmatpush.msra.mxu0 %v27_v6 }
  0x10   :  { %41 = vmatpush.msra.mxu0 %v26_v7 }
  0x12   :  { %42 = vmatpush.msra.mxu0 %v25_v8 }
  0x14   :  { %43 = vmatpush.msra.mxu0 %v24_v9 }
  0x16   :  { %44 = vmatpush.msra.mxu0 %v23_v10 }
  0x18   :  { %45 = vmatpush.msra.mxu0 %v22_v11 }
  0x1a   :  { %46 = vmatpush.msra.mxu0 %v21_v12 }
  0x1c   :  { %47 = vmatpush.msra.mxu0 %v20_v13 }
  0x1e   :  { %48 = vmatpush.msra.mxu0 %v19_v14 }
  0x20   :  { %49 = vmatpush.msra.mxu0 %v18_v15 }
  0x21   :  { %50 = vmatmul.f32.vlgmr.msra.gmra.mxu0 %v17_v16 }
  0x9e   :  { %v51_v19 = vpop.f32.mrf.mxu0 }
  0x9f   :  { %v54_v20 = vmul.f32 %v51_v19, %v51_v19 }
  0xa1   :  { %91 = vmatmul.msk.f32.vlgmr.msra.gmra.mxu1 %vm61_vm0, %v54_v20 }
 0x11e   :  { %v82_v22 = vpop.f32.mrf.mxu1 }
 0x11f   :  { %v83_v23 = vadd.f32 %v92_v21, %v82_v22 }
 0x121   :  { %86 = vst.msk [vmem:[%s185_s4] sm:$0xff] %vm85_vm1, %v83_v23 }

</bundles_post_ra>
